<compile_context>
chip_gen: v5e
topology: v5e:2x2
jax: 0.10.0
libtpu: 0.0.40
codegen_flags: <defaults>
</compile_context>

<pallas_src>
import functools

import jax
import jax.numpy as jnp
from jax.experimental import pallas as pl
from jax.experimental.pallas import tpu as pltpu

# VMEM budgeting: working set must fit comfortably inside v7x's 64 MiB
# physical VMEM; the scoped limit is raised above v5e/v6e/v7x defaults.
_VMEM_WORKING_SET_BUDGET = 40 * 1024 * 1024
_VMEM_LIMIT_BYTES = 48 * 1024 * 1024


def _round_up(x, m):
    return ((x + m - 1) // m) * m


def _make_fused_kernel(num_layers):
    """Kernel: x row tile -> (Linear+ReLU)*(L-1) -> Linear -> log_softmax."""

    def kernel(*refs):
        x_ref, o_ref = refs[0], refs[-1]
        wb_refs = refs[1:-1]            # alternating (w, b) per layer

        h = x_ref[...]                  # f32 (or bf16) row tile; stays in vregs
        # Hidden layers (statically unrolled). Garbage rows in a partial last
        # block are harmless: every op below is row-independent and Pallas
        # drops the out-of-bounds portion of the output writeback.
        for li in range(num_layers - 1):
            w = wb_refs[2 * li][...]
            b = wb_refs[2 * li + 1][...]
            y = jnp.dot(h.astype(w.dtype), w,
                        preferred_element_type=jnp.float32)
            h = jnp.maximum(y + b.astype(jnp.float32), 0.0)   # f32 activations

        # Final Linear + numerically stable log_softmax over the class axis.
        w = wb_refs[-2][...]
        b = wb_refs[-1][...]
        y = jnp.dot(h.astype(w.dtype), w, preferred_element_type=jnp.float32)
        y = y + b.astype(jnp.float32)

        m = jnp.max(y, axis=1, keepdims=True)
        z = y - m
        lse = jnp.log(jnp.sum(jnp.exp(z), axis=1, keepdims=True))
        o_ref[...] = (z - lse).astype(o_ref.dtype)

    return kernel


def init_params(key, nfeat, nclass, n_depth, hidden_dim, dtype=jnp.bfloat16):
    """kaiming_normal-style init (std = sqrt(2 / fan_in)), zero bias.

    Weights stored as [in, out] (transposed vs PyTorch's nn.Linear), bf16.
    Note: for large hidden/nfeat dims, padding them to 128-multiples would
    remove masked-lane work; irrelevant at these toy dims.
    """
    if n_depth == 1:
        dims = [(nfeat, nclass)]
    else:
        dims = [(nfeat, hidden_dim)]
        dims += [(hidden_dim, hidden_dim)] * (n_depth - 2)
        dims += [(hidden_dim, nclass)]
    keys = jax.random.split(key, len(dims))
    params = []
    for k, (fi, fo) in zip(keys, dims):
        std = (2.0 / fi) ** 0.5
        w = (std * jax.random.normal(k, (fi, fo), dtype=jnp.float32)).astype(dtype)
        b = jnp.zeros((1, fo), dtype=jnp.float32)
        params.append((w, b))
    return params


def _choose_tile(n, nfeat, nclass, x_itemsize, resident_bytes, tile_m):
    """Row tile: multiple of 8, >= 2 grid steps when possible, VMEM-budgeted."""
    tile = min(tile_m, _round_up(pl.cdiv(n, 2), 8))   # keep >= 2 steps if n > 8
    tile = max(8, _round_up(tile, 8))

    def est(t):
        x_bytes = t * nfeat * x_itemsize * 2          # double-buffered input tile
        o_bytes = t * nclass * 4 * 2                  # double-buffered f32 output
        return x_bytes + o_bytes + resident_bytes     # single-buffered weights

    while tile > 8 and est(tile) > _VMEM_WORKING_SET_BUDGET:
        tile = max(8, _round_up(tile // 2, 8))
    return tile


@functools.partial(jax.jit, static_argnames=("tile_m",))
def gfs_forward(x, params, *, tile_m=4096):
    n, nfeat = x.shape
    nclass = params[-1][0].shape[1]
    num_layers = len(params)

    resident_bytes = sum(w.size * w.dtype.itemsize + b.size * b.dtype.itemsize
                         for (w, b) in params)
    tile = _choose_tile(n, nfeat, nclass, x.dtype.itemsize, resident_bytes, tile_m)

    operands = [x]                      # fed as-is; cast to bf16 per-tile in-kernel
    in_specs = [pl.BlockSpec((tile, nfeat), lambda i: (i, 0))]
    for (w, b) in params:
        operands.append(w)
        operands.append(b)
        # Resident full blocks (constant index_map); single-buffered since the
        # block never changes across grid steps.
        in_specs.append(pl.BlockSpec(w.shape, lambda i: (0, 0),
                                     pipeline_mode=pl.Buffered(1)))
        in_specs.append(pl.BlockSpec(b.shape, lambda i: (0, 0),
                                     pipeline_mode=pl.Buffered(1)))

    out = pl.pallas_call(
        _make_fused_kernel(num_layers),
        out_shape=jax.ShapeDtypeStruct((n, nclass), jnp.float32),
        grid_spec=pltpu.PrefetchScalarGridSpec(
            num_scalar_prefetch=0,
            grid=(pl.cdiv(n, tile),),
            in_specs=in_specs,
            # Last dim == full class dim (legal even though < 128): writes only
            # the nclass columns instead of a 128-lane padded slab.
            out_specs=pl.BlockSpec((tile, nclass), lambda i: (i, 0)),
        ),
        compiler_params=pltpu.CompilerParams(
            dimension_semantics=("parallel",),
            vmem_limit_bytes=_VMEM_LIMIT_BYTES,
        ),
    )(*operands)
    return out


def _reference(x, params):
    """Pure-JAX reference mirroring the kernel's dtypes (bf16 matmul, f32 rest)."""
    h = x
    for (w, b) in params[:-1]:
        y = jnp.dot(h.astype(w.dtype), w, preferred_element_type=jnp.float32)
        h = jnp.maximum(y + b.astype(jnp.float32), 0.0)
    w, b = params[-1]
    y = jnp.dot(h.astype(w.dtype), w, preferred_element_type=jnp.float32)
    y = y + b.astype(jnp.float32)
    return jax.nn.log_softmax(y, axis=1)


if __name__ == "__main__":
    N, NFEAT, NCLASS, HIDDEN = 250, 32, 16, 64   # N not a tile multiple on purpose

    key = jax.random.PRNGKey(0)
    kx, kp1, kp2 = jax.random.split(key, 3)
    x = jax.random.normal(kx, (N, NFEAT), dtype=jnp.float32)

    # depth = 3: two hidden Linear+ReLU layers + final Linear + log_softmax.
    params3 = init_params(kp1, NFEAT, NCLASS, n_depth=3, hidden_dim=HIDDEN)
    out3 = jax.block_until_ready(gfs_forward(x, params3))
    ref3 = _reference(x, params3)
    assert out3.shape == (N, NCLASS)
    # isfinite is applied only to real rows (out has no padding rows/cols).
    assert bool(jnp.all(jnp.isfinite(out3)))
    assert jnp.allclose(out3, ref3, atol=1e-2, rtol=1e-2), "depth=3 mismatch vs reference"

    # depth = 1: single Linear + log_softmax.
    params1 = init_params(kp2, NFEAT, NCLASS, n_depth=1, hidden_dim=HIDDEN)
    out1 = jax.block_until_ready(gfs_forward(x, params1))
    ref1 = _reference(x, params1)
    assert out1.shape == (N, NCLASS)
    assert jnp.allclose(out1, ref1, atol=1e-2, rtol=1e-2), "depth=1 mismatch vs reference"

    print("KERNEL_OK")
</pallas_src>

<mosaic_0001>
module attributes {stable_mosaic.version = 11 : i64} {
  func.func @kernel(%arg0: i32, %arg1: memref<128x32xf32, #tpu.memory_space<vmem>>, %arg2: memref<32x64xbf16, #tpu.memory_space<vmem>>, %arg3: memref<1x64xf32, #tpu.memory_space<vmem>>, %arg4: memref<64x64xbf16, #tpu.memory_space<vmem>>, %arg5: memref<1x64xf32, #tpu.memory_space<vmem>>, %arg6: memref<64x16xbf16, #tpu.memory_space<vmem>>, %arg7: memref<1x16xf32, #tpu.memory_space<vmem>>, %arg8: memref<128x16xf32, #tpu.memory_space<vmem>>) attributes {dimension_semantics = [#tpu.dimension_semantics<parallel>], iteration_bounds = array<i64: 2>, scalar_prefetch = 0 : i64, scratch_operands = 0 : i64, tpu.core_type = #tpu.core_type<tc>, window_params = [{transform_indices = @transform_0, window_bounds = array<i64: 128, 32>}, {pipeline_mode = #tpu.pipeline_mode<synchronous>, transform_indices = @transform_1, window_bounds = array<i64: 32, 64>}, {pipeline_mode = #tpu.pipeline_mode<synchronous>, transform_indices = @transform_2, window_bounds = array<i64: 1, 64>}, {pipeline_mode = #tpu.pipeline_mode<synchronous>, transform_indices = @transform_3, window_bounds = array<i64: 64, 64>}, {pipeline_mode = #tpu.pipeline_mode<synchronous>, transform_indices = @transform_4, window_bounds = array<i64: 1, 64>}, {pipeline_mode = #tpu.pipeline_mode<synchronous>, transform_indices = @transform_5, window_bounds = array<i64: 64, 16>}, {pipeline_mode = #tpu.pipeline_mode<synchronous>, transform_indices = @transform_6, window_bounds = array<i64: 1, 16>}, {transform_indices = @transform_7, window_bounds = array<i64: 128, 16>}]} {
    %c0 = arith.constant 0 : index
    %c0_0 = arith.constant 0 : index
    %0 = vector.load %arg1[%c0, %c0_0] : memref<128x32xf32, #tpu.memory_space<vmem>>, vector<128x32xf32>
    %c0_1 = arith.constant 0 : index
    %c0_2 = arith.constant 0 : index
    %1 = vector.load %arg2[%c0_1, %c0_2] : memref<32x64xbf16, #tpu.memory_space<vmem>>, vector<32x64xbf16>
    %c0_3 = arith.constant 0 : index
    %c0_4 = arith.constant 0 : index
    %2 = vector.load %arg3[%c0_3, %c0_4] : memref<1x64xf32, #tpu.memory_space<vmem>>, vector<1x64xf32>
    %3 = arith.truncf %0 : vector<128x32xf32> to vector<128x32xbf16>
    %cst = arith.constant dense<0.000000e+00> : vector<128x64xf32>
    %4 = tpu.matmul %3, %1, %cst {dimension_numbers = #tpu.dot_dimension_numbers<[1], [0], [0], [1], [0, 0, 1, 1], [], []>} : vector<128x32xbf16>, vector<32x64xbf16>, vector<128x64xf32> -> vector<128x64xf32>
    %5 = vector.broadcast %2 : vector<1x64xf32> to vector<128x64xf32>
    %6 = arith.addf %4, %5 : vector<128x64xf32>
    %cst_5 = arith.constant 0.000000e+00 : f32
    %7 = vector.broadcast %cst_5 : f32 to vector<128x64xf32>
    %8 = arith.maximumf %6, %7 : vector<128x64xf32>
    %c0_6 = arith.constant 0 : index
    %c0_7 = arith.constant 0 : index
    %9 = vector.load %arg4[%c0_6, %c0_7] : memref<64x64xbf16, #tpu.memory_space<vmem>>, vector<64x64xbf16>
    %c0_8 = arith.constant 0 : index
    %c0_9 = arith.constant 0 : index
    %10 = vector.load %arg5[%c0_8, %c0_9] : memref<1x64xf32, #tpu.memory_space<vmem>>, vector<1x64xf32>
    %11 = arith.truncf %8 : vector<128x64xf32> to vector<128x64xbf16>
    %cst_10 = arith.constant dense<0.000000e+00> : vector<128x64xf32>
    %12 = tpu.matmul %11, %9, %cst_10 {dimension_numbers = #tpu.dot_dimension_numbers<[1], [0], [0], [1], [0, 0, 1, 1], [], []>} : vector<128x64xbf16>, vector<64x64xbf16>, vector<128x64xf32> -> vector<128x64xf32>
    %13 = vector.broadcast %10 : vector<1x64xf32> to vector<128x64xf32>
    %14 = arith.addf %12, %13 : vector<128x64xf32>
    %cst_11 = arith.constant 0.000000e+00 : f32
    %15 = vector.broadcast %cst_11 : f32 to vector<128x64xf32>
    %16 = arith.maximumf %14, %15 : vector<128x64xf32>
    %c0_12 = arith.constant 0 : index
    %c0_13 = arith.constant 0 : index
    %17 = vector.load %arg6[%c0_12, %c0_13] : memref<64x16xbf16, #tpu.memory_space<vmem>>, vector<64x16xbf16>
    %c0_14 = arith.constant 0 : index
    %c0_15 = arith.constant 0 : index
    %18 = vector.load %arg7[%c0_14, %c0_15] : memref<1x16xf32, #tpu.memory_space<vmem>>, vector<1x16xf32>
    %19 = arith.truncf %16 : vector<128x64xf32> to vector<128x64xbf16>
    %cst_16 = arith.constant dense<0.000000e+00> : vector<128x16xf32>
    %20 = tpu.matmul %19, %17, %cst_16 {dimension_numbers = #tpu.dot_dimension_numbers<[1], [0], [0], [1], [0, 0, 1, 1], [], []>} : vector<128x64xbf16>, vector<64x16xbf16>, vector<128x16xf32> -> vector<128x16xf32>
    %21 = vector.broadcast %18 : vector<1x16xf32> to vector<128x16xf32>
    %22 = arith.addf %20, %21 : vector<128x16xf32>
    %cst_17 = arith.constant dense<0xFF800000> : vector<128xf32>
    %23 = vector.multi_reduction <maximumf>, %22, %cst_17 [1] : vector<128x16xf32> to vector<128xf32>
    %24 = vector.shape_cast %23 : vector<128xf32> to vector<128x1xf32>
    %25 = vector.broadcast %24 : vector<128x1xf32> to vector<128x16xf32>
    %26 = arith.subf %22, %25 : vector<128x16xf32>
    %27 = math.exp %26 : vector<128x16xf32>
    %cst_18 = arith.constant dense<0.000000e+00> : vector<128xf32>
    %28 = vector.multi_reduction <add>, %27, %cst_18 [1] : vector<128x16xf32> to vector<128xf32>
    %29 = vector.shape_cast %28 : vector<128xf32> to vector<128x1xf32>
    %30 = math.log %29 : vector<128x1xf32>
    %31 = vector.broadcast %30 : vector<128x1xf32> to vector<128x16xf32>
    %32 = arith.subf %26, %31 : vector<128x16xf32>
    %c0_19 = arith.constant 0 : index
    %c0_20 = arith.constant 0 : index
    %33 = vector.load %arg8[%c0_19, %c0_20] : memref<128x16xf32, #tpu.memory_space<vmem>>, vector<128x16xf32>
    tpu.vector_store %arg8[%c0_19, %c0_20], %32 {strides = array<i32>} : memref<128x16xf32, #tpu.memory_space<vmem>>, vector<128x16xf32>,
    return
  }
  func.func @transform_0(%arg0: i32) -> (i32, i32) {
    %c0_i32 = arith.constant 0 : i32
    %c0_i32_0 = arith.constant 0 : i32
    return %arg0, %c0_i32 : i32, i32
  }
  func.func @transform_1(%arg0: i32) -> (i32, i32) {
    %c0_i32 = arith.constant 0 : i32
    %c0_i32_0 = arith.constant 0 : i32
    %c0_i32_1 = arith.constant 0 : i32
    return %c0_i32, %c0_i32_0 : i32, i32
  }
  func.func @transform_2(%arg0: i32) -> (i32, i32) {
    %c0_i32 = arith.constant 0 : i32
    %c0_i32_0 = arith.constant 0 : i32
    %c0_i32_1 = arith.constant 0 : i32
    return %c0_i32, %c0_i32_0 : i32, i32
  }
  func.func @transform_3(%arg0: i32) -> (i32, i32) {
    %c0_i32 = arith.constant 0 : i32
    %c0_i32_0 = arith.constant 0 : i32
    %c0_i32_1 = arith.constant 0 : i32
    return %c0_i32, %c0_i32_0 : i32, i32
  }
  func.func @transform_4(%arg0: i32) -> (i32, i32) {
    %c0_i32 = arith.constant 0 : i32
    %c0_i32_0 = arith.constant 0 : i32
    %c0_i32_1 = arith.constant 0 : i32
    return %c0_i32, %c0_i32_0 : i32, i32
  }
  func.func @transform_5(%arg0: i32) -> (i32, i32) {
    %c0_i32 = arith.constant 0 : i32
    %c0_i32_0 = arith.constant 0 : i32
    %c0_i32_1 = arith.constant 0 : i32
    return %c0_i32, %c0_i32_0 : i32, i32
  }
  func.func @transform_6(%arg0: i32) -> (i32, i32) {
    %c0_i32 = arith.constant 0 : i32
    %c0_i32_0 = arith.constant 0 : i32
    %c0_i32_1 = arith.constant 0 : i32
    return %c0_i32, %c0_i32_0 : i32, i32
  }
  func.func @transform_7(%arg0: i32) -> (i32, i32) {
    %c0_i32 = arith.constant 0 : i32
    %c0_i32_0 = arith.constant 0 : i32
    return %arg0, %c0_i32 : i32, i32
  }
}

</mosaic_0001>

<bundles_post_ra>
// kernel: gfs_forward.1
= control target key start
LH: loop header
LB: loop body
LE: loop exit
PB: predicated region body
PF: predicated region fallthrough
CT: control target
= control target key end

     0   :  { %s1151_s24 = smov 0   ;;  %s1478_s0 = inlined_call_operand.vmem [shape: f32[250,32], index: 0, kind: input, shape index: {}]   ;;  %s1479_s1 = inlined_call_operand.vmem [shape: bf16[32,64], index: 1, kind: input, shape index: {}]   ;;  %s1480_s2 = inlined_call_operand.vmem [shape: f32[1,64], index: 2, kind: input, shape index: {}]   ;;  %s1481_s3 = inlined_call_operand.vmem [shape: bf16[64,64], index: 3, kind: input, shape index: {}]   ;;  %s1482_s4 = inlined_call_operand.vmem [shape: f32[1,64], index: 4, kind: input, shape index: {}]   ;;  %s1483_s5 = inlined_call_operand.vmem [shape: bf16[64,16], index: 5, kind: input, shape index: {}]   ;;  %s1484_s6 = inlined_call_operand.vmem [shape: f32[1,16], index: 6, kind: input, shape index: {}]   ;;  %s1485_s7 = inlined_call_operand.vmem [shape: f32[250,16], index: 7, kind: output, shape index: {}]  }
   0x1 LB: > { %s933_s25 = sadd.s32 4294967295, %s1109_s24   ;;  %p937_p0 = scmp.ge.s32.totalorder %s1109_s24, 1  ;;  %s1109_s24 = sphi %s1151_s24, %s17_s24  }
   0x2   : > { %p238_p1 = scmp.lt.s32.totalorder %s1109_s24, 3 }
   0x4   : > { %p239_p2 = pnand %p937_p0, %p238_p1 }
   0x5   : > { %s938_s28 = sshll.u32 (!%p239_p2), %s933_s25, 4 }
   0x6   : > { %242 = sbr.rel (%p239_p2) target bundleno = 816 (0x330), region = 48  ;;  %p271_p3 = scmp.lt.s32.totalorder (!%p239_p2), %s938_s28, 31 }
   0xb   : > { %v1009_v0 = vld [vmem:[%s1479_s1 + $0x8] sm:$0xff]  ;;  %v1008_v1 = vld [vmem:[%s1479_s1] sm:$0xff]  ;;  %s1487_s28 = smov (!%p271_p3, %s938_s28), 31  ;;  %vm327_vm0 = vcmask 261120   ;;  %v1013_v25 = vld [vmem:[%s1481_s3 + $0x18] sm:$0xff]  ;;  %vm461_vm1 = vcmask 523264  }
   0xc   : > { %358 = vmatpush.bf16.msra.mxu0 %v1009_v0  ;;  %1018 = vmatpush.bf16.msra.mxu3 %v1009_v0  ;;  %s939_s8 = sshll.u32 %s1487_s28, 3  ;;  %v1012_v27 = vld [vmem:[%s1481_s3 + $0x10] sm:$0xff]  ;;  %v1011_v28 = vld [vmem:[%s1481_s3 + $0x8] sm:$0xff]  ;;  %v1010_v29 = vld [vmem:[%s1481_s3] sm:$0xff]  ;;  %vm668_vm2 = vcmask 130048  }
   0xd   : > { %s1173_s11 = scalar_lea.vmem %s1478_s0, %s939_s8  ;;  %490 = vmatpush.bf16.msra.mxu1 %v1013_v25  ;;  %v1214_v31 = vld [vmem:[%s1480_s2] ss:$0 sm:$0xff]  ;;  %s1424_s16 = scalar_lea.vmem %s1485_s7, %s939_s8 }
   0xe   : > { %v283_v2 = vld [vmem:[%s1173_s11] sm:$0xff]  ;;  %v284_v3 = vld [vmem:[%s1173_s11 + $0x8] sm:$0xff]  ;;  %v285_v5 = vld [vmem:[%s1173_s11 + $0x10] sm:$0xff] }
   0xf   : > { %v304_v4 = vpack.c.bf16 %v284_v3, %v283_v2  ;;  %v286_v6 = vld [vmem:[%s1173_s11 + $0x18] sm:$0xff]  ;;  %v287_v8 = vld [vmem:[%s1173_s11 + $0x20] sm:$0xff]  ;;  %v288_v9 = vld [vmem:[%s1173_s11 + $0x28] sm:$0xff] }
  0x10   : > { %359 = vmatpush.bf16.msra.mxu0 %v1008_v1  ;;  %1019 = vmatpush.bf16.msra.mxu3 %v1008_v1  ;;  %v305_v7 = vpack.c.bf16 %v286_v6, %v285_v5  ;;  %v306_v10 = vpack.c.bf16 %v288_v9, %v287_v8  ;;  %v289_v11 = vld [vmem:[%s1173_s11 + $0x30] sm:$0xff]  ;;  %v290_v12 = vld [vmem:[%s1173_s11 + $0x38] sm:$0xff]  ;;  %v291_v14 = vld [vmem:[%s1173_s11 + $0x40] sm:$0xff] }
  0x11   : > { %v307_v13 = vpack.c.bf16 %v290_v12, %v289_v11  ;;  %v292_v15 = vld [vmem:[%s1173_s11 + $0x48] sm:$0xff]  ;;  %v297_v17 = vld [vmem:[%s1173_s11 + $0x70] sm:$0xff]  ;;  %v298_v18 = vld [vmem:[%s1173_s11 + $0x78] sm:$0xff]  ;;  %491 = vmatpush.bf16.msra.mxu1 %v1012_v27 }
  0x12   : > { %v308_v16 = vpack.c.bf16 %v292_v15, %v291_v14  ;;  %v311_v19 = vpack.c.bf16 %v298_v18, %v297_v17  ;;  %v293_v20 = vld [vmem:[%s1173_s11 + $0x50] sm:$0xff]  ;;  %v294_v21 = vld [vmem:[%s1173_s11 + $0x58] sm:$0xff]  ;;  %v295_v23 = vld [vmem:[%s1173_s11 + $0x60] sm:$0xff] }
  0x13   : > { %950 = vmatmul.msk.bf16.vlgmr.msra.gmra.mxu0 %vm327_vm0, %v304_v4  ;;  %v309_v22 = vpack.c.bf16 %v294_v21, %v293_v20  ;;  %v296_v24 = vld [vmem:[%s1173_s11 + $0x68] sm:$0xff]  ;;  %v1017_v14 = vld [vmem:[%s1483_s5 + $0x18] sm:$0xff]  ;;  %v1016_v18 = vld [vmem:[%s1483_s5 + $0x10] sm:$0xff] }
  0x14   : > { %957 = vmatmul.msk.bf16.vlgmr.msra.gmra.mxu3 %vm327_vm0, %v311_v19  ;;  %v310_v26 = vpack.c.bf16 %v296_v24, %v295_v23  ;;  %623 = vmatpush.bf16.msra.mxu2 %v1017_v14  ;;  %v1015_v20 = vld [vmem:[%s1483_s5 + $0x8] sm:$0xff]  ;;  %v1014_v23 = vld [vmem:[%s1483_s5] sm:$0xff] }
  0x15   : > { %1020 = vmatpush.bf16.msrb.mxu3 %v1013_v25  ;;  %492 = vmatpush.bf16.msra.mxu1 %v1011_v28 }
  0x18   : > { %624 = vmatpush.bf16.msra.mxu2 %v1016_v18 }
  0x19   : > { %1021 = vmatpush.bf16.msrb.mxu3 %v1012_v27  ;;  %493 = vmatpush.bf16.msra.mxu1 %v1010_v29 }
  0x1c   : > { %625 = vmatpush.bf16.msra.mxu2 %v1015_v20 }
  0x1d   : > { %1022 = vmatpush.bf16.msrb.mxu3 %v1011_v28  ;;  %v1037_v28 = vld [vmem:[%s1482_s4] ss:$0 sm:$0xff] }
  0x20   : > { %626 = vmatpush.bf16.msra.mxu2 %v1014_v23 }
  0x21   : > { %1023 = vmatpush.bf16.msrb.mxu3 %v1010_v29 }
  0x23   : > { %951 = vmatmul.msk.bf16.gmra.mxu0 %vm327_vm0, %v305_v7 }
  0x25   : > { %1024 = vmatpush.bf16.msra.mxu3 %v1017_v14 }
  0x29   : > { %1025 = vmatpush.bf16.msra.mxu3 %v1016_v18 }
  0x2d   : > { %1026 = vmatpush.bf16.msra.mxu3 %v1015_v20  ;;  %v1266_v20 = vld [vmem:[%s1484_s6] ss:$0 sm:$0xff] }
  0x31   : > { %1027 = vmatpush.bf16.msra.mxu3 %v1014_v23 }
  0x33   : > { %952 = vmatmul.msk.bf16.gmra.mxu0 %vm327_vm0, %v306_v10 }
  0x43   : > { %953 = vmatmul.msk.bf16.gmra.mxu0 %vm327_vm0, %v307_v13 }
  0x53   : > { %954 = vmatmul.msk.bf16.gmra.mxu0 %vm327_vm0, %v308_v16 }
  0x63   : > { %955 = vmatmul.msk.bf16.gmra.mxu0 %vm327_vm0, %v309_v22 }
  0x73   : > { %956 = vmatmul.msk.bf16.gmra.mxu0 %vm327_vm0, %v310_v26 }
  0x90   : > { %v361_v30 = vpop.f32.mrf.mxu0 }
  0x91   : > { %v362_v32 = vadd.f32 %v1214_v31, %v361_v30 }
  0x93   : > { %v401_v35 = vmax.f32 %v362_v32, 0.0 }
  0x97   : > { %v396_v12 = vpop.f32.mrf.mxu3 }
  0x98   : > { %v363_v33 = vpop.f32.mrf.mxu0  ;;  %v397_v21 = vadd.f32 %v1214_v31, %v396_v12 }
  0x99   : > { %v364_v34 = vadd.f32 %v1214_v31, %v363_v33 }
  0x9a   : > { %v415_v24 = vmax.f32 %v397_v21, 0.0 }
  0x9b   : > { %v402_v36 = vmax.f32 %v364_v34, 0.0 }
  0x9d   : > { %v426_v37 = vpack.c.bf16 %v402_v36, %v401_v35 }
  0x9f   : > { %974 = vmatmul.msk.bf16.vlgmr.msra.gmra.mxu1 %vm461_vm1, %v426_v37  ;;  %v398_v19 = vpop.f32.mrf.mxu3 }
  0xa0   : > { %v366_v38 = vpop.f32.mrf.mxu0  ;;  %v399_v22 = vadd.f32 %v1214_v31, %v398_v19 }
  0xa1   : > { %v367_v39 = vadd.f32 %v1214_v31, %v366_v38 }
  0xa2   : > { %v416_v25 = vmax.f32 %v399_v22, 0.0 }
  0xa3   : > { %v403_v42 = vmax.f32 %v367_v39, 0.0 }
  0xa4   : > { %v433_v26 = vpack.c.bf16 %v416_v25, %v415_v24 }
  0xa8   : > { %v368_v40 = vpop.f32.mrf.mxu0 }
  0xa9   : > { %v369_v41 = vadd.f32 %v1214_v31, %v368_v40 }
  0xab   : > { %v404_v43 = vmax.f32 %v369_v41, 0.0 }
  0xad   : > { %v427_v44 = vpack.c.bf16 %v404_v43, %v403_v42 }
  0xaf   : > { %975 = vmatmul.msk.bf16.gmra.mxu1 %vm461_vm1, %v427_v44 }
  0xb0   : > { %v371_v45 = vpop.f32.mrf.mxu0 }
  0xb1   : > { %v372_v46 = vadd.f32 %v1214_v31, %v371_v45 }
  0xb3   : > { %v405_v49 = vmax.f32 %v372_v46, 0.0 }
  0xb8   : > { %v373_v47 = vpop.f32.mrf.mxu0 }
  0xb9   : > { %v374_v48 = vadd.f32 %v1214_v31, %v373_v47 }
  0xbb   : > { %v406_v50 = vmax.f32 %v374_v48, 0.0 }
  0xbd   : > { %v428_v51 = vpack.c.bf16 %v406_v50, %v405_v49 }
  0xbf   : > { %976 = vmatmul.msk.bf16.gmra.mxu1 %vm461_vm1, %v428_v51 }
  0xc0   : > { %v376_v52 = vpop.f32.mrf.mxu0 }
  0xc1   : > { %v377_v53 = vadd.f32 %v1214_v31, %v376_v52 }
  0xc3   : > { %v407_v56 = vmax.f32 %v377_v53, 0.0 }
  0xc8   : > { %v378_v54 = vpop.f32.mrf.mxu0 }
  0xc9   : > { %v379_v55 = vadd.f32 %v1214_v31, %v378_v54 }
  0xcb   : > { %v408_v57 = vmax.f32 %v379_v55, 0.0 }
  0xcd   : > { %v429_v58 = vpack.c.bf16 %v408_v57, %v407_v56 }
  0xcf   : > { %977 = vmatmul.msk.bf16.gmra.mxu1 %vm461_vm1, %v429_v58 }
  0xd0   : > { %v381_v59 = vpop.f32.mrf.mxu0 }
  0xd1   : > { %v382_v60 = vadd.f32 %v1214_v31, %v381_v59 }
  0xd3   : > { %v409_v63 = vmax.f32 %v382_v60, 0.0 }
  0xd8   : > { %v383_v61 = vpop.f32.mrf.mxu0 }
  0xd9   : > { %v384_v62 = vadd.f32 %v1214_v31, %v383_v61 }
  0xdb   : > { %v410_v0 = vmax.f32 %v384_v62, 0.0 }
  0xdd   : > { %v430_v1 = vpack.c.bf16 %v410_v0, %v409_v63 }
  0xdf   : > { %978 = vmatmul.msk.bf16.gmra.mxu1 %vm461_vm1, %v430_v1 }
  0xe0   : > { %v386_v2 = vpop.f32.mrf.mxu0 }
  0xe1   : > { %v387_v3 = vadd.f32 %v1214_v31, %v386_v2 }
  0xe3   : > { %v411_v6 = vmax.f32 %v387_v3, 0.0 }
  0xe8   : > { %v388_v4 = vpop.f32.mrf.mxu0 }
  0xe9   : > { %v389_v5 = vadd.f32 %v1214_v31, %v388_v4 }
  0xeb   : > { %v412_v7 = vmax.f32 %v389_v5, 0.0 }
  0xed   : > { %v431_v8 = vpack.c.bf16 %v412_v7, %v411_v6 }
  0xef   : > { %979 = vmatmul.msk.bf16.gmra.mxu1 %vm461_vm1, %v431_v8 }
  0xf0   : > { %v391_v9 = vpop.f32.mrf.mxu0 }
  0xf1   : > { %v392_v10 = vadd.f32 %v1214_v31, %v391_v9 }
  0xf3   : > { %v413_v15 = vmax.f32 %v392_v10, 0.0 }
  0xf8   : > { %v393_v11 = vpop.f32.mrf.mxu0 }
  0xf9   : > { %v394_v13 = vadd.f32 %v1214_v31, %v393_v11 }
  0xfb   : > { %v414_v16 = vmax.f32 %v394_v13, 0.0 }
  0xfd   : > { %v432_v17 = vpack.c.bf16 %v414_v16, %v413_v15 }
  0xff   : > { %980 = vmatmul.msk.bf16.vlgmr.msrb.gmra.mxu3 %vm461_vm1, %v432_v17 }
 0x10f   : > { %981 = vmatmul.msk.bf16.gmra.mxu3 %vm461_vm1, %v433_v26 }
 0x11c   : > { %v495_v27 = vpop.f32.mrf.mxu1 }
 0x11d   : > { %v496_v29 = vadd.f32 %v1037_v28, %v495_v27 }
 0x11f   : > { %v535_v31 = vmax.f32 %v496_v29, 0.0 }
 0x124   : > { %v497_v30 = vpop.f32.mrf.mxu1 }
 0x125   : > { %v498_v32 = vadd.f32 %v1037_v28, %v497_v30 }
 0x127   : > { %v536_v33 = vmax.f32 %v498_v32, 0.0 }
 0x129   : > { %v560_v34 = vpack.c.bf16 %v536_v33, %v535_v31 }
 0x12b   : > { %998 = vmatmul.msk.bf16.vlgmr.msra.gmra.mxu2 %vm461_vm1, %v560_v34 }
 0x12c   : > { %v500_v35 = vpop.f32.mrf.mxu1 }
 0x12d   : > { %v501_v36 = vadd.f32 %v1037_v28, %v500_v35 }
 0x12f   : > { %v537_v39 = vmax.f32 %v501_v36, 0.0 }
 0x134   : > { %v502_v37 = vpop.f32.mrf.mxu1 }
 0x135   : > { %v503_v38 = vadd.f32 %v1037_v28, %v502_v37 }
 0x137   : > { %v538_v40 = vmax.f32 %v503_v38, 0.0 }
 0x139   : > { %v561_v41 = vpack.c.bf16 %v538_v40, %v537_v39 }
 0x13b   : > { %999 = vmatmul.msk.bf16.gmra.mxu2 %vm461_vm1, %v561_v41 }
 0x13c   : > { %v505_v42 = vpop.f32.mrf.mxu1 }
 0x13d   : > { %v506_v43 = vadd.f32 %v1037_v28, %v505_v42 }
 0x13f   : > { %v539_v46 = vmax.f32 %v506_v43, 0.0 }
 0x144   : > { %v507_v44 = vpop.f32.mrf.mxu1 }
 0x145   : > { %v508_v45 = vadd.f32 %v1037_v28, %v507_v44 }
 0x147   : > { %v540_v47 = vmax.f32 %v508_v45, 0.0 }
 0x149   : > { %v562_v48 = vpack.c.bf16 %v540_v47, %v539_v46 }
 0x14b   : > { %1000 = vmatmul.msk.bf16.gmra.mxu2 %vm461_vm1, %v562_v48 }
 0x14c   : > { %v510_v49 = vpop.f32.mrf.mxu1 }
 0x14d   : > { %v511_v50 = vadd.f32 %v1037_v28, %v510_v49 }
 0x14f   : > { %v541_v53 = vmax.f32 %v511_v50, 0.0 }
 0x154   : > { %v512_v51 = vpop.f32.mrf.mxu1 }
 0x155   : > { %v513_v52 = vadd.f32 %v1037_v28, %v512_v51 }
 0x157   : > { %v542_v54 = vmax.f32 %v513_v52, 0.0 }
 0x159   : > { %v563_v55 = vpack.c.bf16 %v542_v54, %v541_v53 }
 0x15b   : > { %1001 = vmatmul.msk.bf16.gmra.mxu2 %vm461_vm1, %v563_v55 }
 0x15c   : > { %v515_v56 = vpop.f32.mrf.mxu1 }
 0x15d   : > { %v516_v57 = vadd.f32 %v1037_v28, %v515_v56 }
 0x15f   : > { %v543_v60 = vmax.f32 %v516_v57, 0.0 }
 0x164   : > { %v517_v58 = vpop.f32.mrf.mxu1 }
 0x165   : > { %v518_v59 = vadd.f32 %v1037_v28, %v517_v58 }
 0x167   : > { %v544_v61 = vmax.f32 %v518_v59, 0.0 }
 0x169   : > { %v564_v62 = vpack.c.bf16 %v544_v61, %v543_v60 }
 0x16b   : > { %1002 = vmatmul.msk.bf16.gmra.mxu2 %vm461_vm1, %v564_v62 }
 0x16c   : > { %v520_v63 = vpop.f32.mrf.mxu1 }
 0x16d   : > { %v521_v0 = vadd.f32 %v1037_v28, %v520_v63 }
 0x16f   : > { %v545_v3 = vmax.f32 %v521_v0, 0.0 }
 0x174   : > { %v522_v1 = vpop.f32.mrf.mxu1 }
 0x175   : > { %v523_v2 = vadd.f32 %v1037_v28, %v522_v1 }
 0x177   : > { %v546_v4 = vmax.f32 %v523_v2, 0.0 }
 0x179   : > { %v565_v5 = vpack.c.bf16 %v546_v4, %v545_v3 }
 0x17b   : > { %1003 = vmatmul.msk.bf16.gmra.mxu2 %vm461_vm1, %v565_v5 }
 0x182   : > { %v525_v6 = vpop.f32.mrf.mxu3 }
 0x183   : > { %v526_v7 = vadd.f32 %v1037_v28, %v525_v6 }
 0x185   : > { %v547_v10 = vmax.f32 %v526_v7, 0.0 }
 0x18a   : > { %v527_v8 = vpop.f32.mrf.mxu3 }
 0x18b   : > { %v528_v9 = vadd.f32 %v1037_v28, %v527_v8 }
 0x18d   : > { %v548_v11 = vmax.f32 %v528_v9, 0.0 }
 0x18f   : > { %v566_v12 = vpack.c.bf16 %v548_v11, %v547_v10 }
 0x191   : > { %1004 = vmatmul.msk.bf16.vlgmr.msra.gmra.mxu3 %vm461_vm1, %v566_v12 }
 0x192   : > { %v530_v13 = vpop.f32.mrf.mxu3 }
 0x193   : > { %v531_v14 = vadd.f32 %v1037_v28, %v530_v13 }
 0x195   : > { %v549_v17 = vmax.f32 %v531_v14, 0.0 }
 0x19a   : > { %v532_v15 = vpop.f32.mrf.mxu3 }
 0x19b   : > { %v533_v16 = vadd.f32 %v1037_v28, %v532_v15 }
 0x19d   : > { %v550_v18 = vmax.f32 %v533_v16, 0.0 }
 0x19f   : > { %v567_v19 = vpack.c.bf16 %v550_v18, %v549_v17 }
 0x1a1   : > { %1005 = vmatmul.msk.bf16.gmra.mxu3 %vm461_vm1, %v567_v19 }
 0x1ae   : > { %v628_v21 = vpop.f32.mrf.mxu2 }
 0x1af   : > { %v629_v22 = vadd.f32 %v1266_v20, %v628_v21 }
 0x1b1   : > { %v669_v23 = vsel %vm668_vm2, %v629_v22, -inf }
 0x1b2   : > { %670 = vmax.xlane.f32.xlu0 %v669_v23 }
 0x1b6   : > { %v630_v24 = vpop.f32.mrf.mxu2 }
 0x1b7   : > { %v631_v25 = vadd.f32 %v1266_v20, %v630_v24 }
 0x1b9   : > { %v672_v26 = vsel %vm668_vm2, %v631_v25, -inf }
 0x1ba   : > { %673 = vmax.xlane.f32.xlu0 %v672_v26 }
 0x1be   : > { %v633_v27 = vpop.f32.mrf.mxu2 }
 0x1bf   : > { %v1273_v28 = vadd.f32 %v1266_v20, %v633_v27 }
 0x1c1   : > { %v675_v29 = vsel %vm668_vm2, %v1273_v28, -inf }
 0x1c2   : > { %676 = vmax.xlane.f32.xlu1 %v675_v29 }
 0x1c6   : > { %v635_v30 = vpop.f32.mrf.mxu2 }
 0x1c7   : > { %v1278_v32 = vadd.f32 %v1266_v20, %v635_v30 }
 0x1c9   : > { %v678_v31 = vsel %vm668_vm2, %v1278_v32, -inf }
 0x1ca   : > { %679 = vmax.xlane.f32.xlu1 %v678_v31 }
 0x1ce   : > { %v638_v33 = vpop.f32.mrf.mxu2 }
 0x1cf   : > { %v1283_v34 = vadd.f32 %v1266_v20, %v638_v33 }
 0x1d1   : > { %v681_v35 = vsel %vm668_vm2, %v1283_v34, -inf }
 0x1d2   : > { %682 = vmax.xlane.f32.xlu2 %v681_v35 }
 0x1d6   : > { %v640_v36 = vpop.f32.mrf.mxu2 }
 0x1d7   : > { %v1288_v37 = vadd.f32 %v1266_v20, %v640_v36 }
 0x1d9   : > { %v684_v38 = vsel %vm668_vm2, %v1288_v37, -inf }
 0x1da   : > { %685 = vmax.xlane.f32.xlu2 %v684_v38 }
 0x1de   : > { %v643_v39 = vpop.f32.mrf.mxu2 }
 0x1df   : > { %v1293_v40 = vadd.f32 %v1266_v20, %v643_v39 }
 0x1e1   : > { %v687_v41 = vsel %vm668_vm2, %v1293_v40, -inf }
 0x1e2   : > { %688 = vmax.xlane.f32.xlu0 %v687_v41 }
 0x1e6   : > { %v645_v42 = vpop.f32.mrf.mxu2 }
 0x1e7   : > { %v1298_v43 = vadd.f32 %v1266_v20, %v645_v42 }
 0x1e9   : > { %v690_v44 = vsel %vm668_vm2, %v1298_v43, -inf }
 0x1ea   : > { %691 = vmax.xlane.f32.xlu1 %v690_v44 }
 0x1ee   : > { %v648_v45 = vpop.f32.mrf.mxu2 }
 0x1ef   : > { %v1303_v46 = vadd.f32 %v1266_v20, %v648_v45 }
 0x1f1   : > { %v693_v47 = vsel %vm668_vm2, %v1303_v46, -inf }
 0x1f2   : > { %694 = vmax.xlane.f32.xlu2 %v693_v47 }
 0x1f6   : > { %v650_v48 = vpop.f32.mrf.mxu2 }
 0x1f7   : > { %v1308_v49 = vadd.f32 %v1266_v20, %v650_v48 }
 0x1f9   : > { %v696_v50 = vsel %vm668_vm2, %v1308_v49, -inf }
 0x1fa   : > { %697 = vmax.xlane.f32.xlu0 %v696_v50 }
 0x1fe   : > { %v653_v51 = vpop.f32.mrf.mxu2 }
 0x1ff   : > { %v1313_v52 = vadd.f32 %v1266_v20, %v653_v51 }
 0x201   : > { %v699_v53 = vsel %vm668_vm2, %v1313_v52, -inf }
 0x202   : > { %700 = vmax.xlane.f32.xlu1 %v699_v53 }
 0x206   : > { %v655_v54 = vpop.f32.mrf.mxu2 }
 0x207   : > { %v1318_v55 = vadd.f32 %v1266_v20, %v655_v54 }
 0x209   : > { %v702_v56 = vsel %vm668_vm2, %v1318_v55, -inf }
 0x20a   : > { %703 = vmax.xlane.f32.xlu2 %v702_v56 }
 0x214   : > { %v658_v57 = vpop.f32.mrf.mxu3 }
 0x215   : > { %v1323_v58 = vadd.f32 %v1266_v20, %v658_v57 }
 0x217   : > { %v705_v59 = vsel %vm668_vm2, %v1323_v58, -inf }
 0x218   : > { %706 = vmax.xlane.f32.xlu0 %v705_v59 }
 0x21c   : > { %v660_v60 = vpop.f32.mrf.mxu3 }
 0x21d   : > { %v1328_v61 = vadd.f32 %v1266_v20, %v660_v60 }
 0x21f   : > { %v708_v62 = vsel %vm668_vm2, %v1328_v61, -inf }
 0x220   : > { %709 = vmax.xlane.f32.xlu1 %v708_v62 }
 0x224   : > { %v663_v63 = vpop.f32.mrf.mxu3 }
 0x225   : > { %v1333_v0 = vadd.f32 %v1266_v20, %v663_v63  ;;  %v671_v1 = vpop.xlane.xlu0 %670 }
 0x226   : > { %v1335_v2 = vsub.f32 %v629_v22, %v671_v1 }
 0x227   : > { %v711_v3 = vsel %vm668_vm2, %v1333_v0, -inf }
 0x228   : > { %v733_v4 = vmul.f32 1.442695, %v1335_v2  ;;  %712 = vmax.xlane.f32.xlu2 %v711_v3 }
 0x22a   : > { %1039 = vpow2.f32 %v733_v4 }
 0x22c   : > { %v665_v5 = vpop.f32.mrf.mxu3 }
 0x22d   : > { %v1341_v6 = vadd.f32 %v1266_v20, %v665_v5  ;;  %v674_v7 = vpop.xlane.xlu0 %673 }
 0x22e   : > { %v1343_v8 = vsub.f32 %v631_v25, %v674_v7 }
 0x22f   : > { %v714_v9 = vsel %vm668_vm2, %v1341_v6, -inf }
 0x230   : > { %v1040_v10 = vpop.eup %1039  ;;  %v735_v11 = vmul.f32 1.442695, %v1343_v8  ;;  %715 = vmax.xlane.f32.xlu0 %v714_v9 }
 0x231   : > { %v765_v12 = vsel %vm668_vm2, %v1040_v10, 0.0 }
 0x232   : > { %1041 = vpow2.f32 %v735_v11  ;;  %766 = vadd.xlane.f32.xlu1 %v765_v12 }
 0x235   : > { %v677_v13 = vpop.xlane.xlu1 %676 }
 0x236   : > { %v1350_v14 = vsub.f32 %v1273_v28, %v677_v13 }
 0x238   : > { %v1042_v15 = vpop.eup %1041  ;;  %v737_v16 = vmul.f32 1.442695, %v1350_v14 }
 0x239   : > { %v768_v17 = vsel %vm668_vm2, %v1042_v15, 0.0 }
 0x23a   : > { %1043 = vpow2.f32 %v737_v16  ;;  %769 = vadd.xlane.f32.xlu2 %v768_v17 }
 0x23d   : > { %v680_v18 = vpop.xlane.xlu1 %679 }
 0x23e   : > { %v1355_v19 = vsub.f32 %v1278_v32, %v680_v18 }
 0x240   : > { %v1044_v20 = vpop.eup %1043  ;;  %v739_v21 = vmul.f32 1.442695, %v1355_v19 }
 0x241   : > { %v771_v22 = vsel %vm668_vm2, %v1044_v20, 0.0 }
 0x242   : > { %1045 = vpow2.f32 %v739_v21  ;;  %772 = vadd.xlane.f32.xlu0 %v771_v22 }
 0x245   : > { %v683_v23 = vpop.xlane.xlu2 %682 }
 0x246   : > { %v1360_v24 = vsub.f32 %v1283_v34, %v683_v23 }
 0x248   : > { %v1046_v25 = vpop.eup %1045  ;;  %v741_v26 = vmul.f32 1.442695, %v1360_v24 }
 0x249   : > { %v774_v27 = vsel %vm668_vm2, %v1046_v25, 0.0 }
 0x24a   : > { %1047 = vpow2.f32 %v741_v26  ;;  %775 = vadd.xlane.f32.xlu1 %v774_v27 }
 0x24d   : > { %v686_v28 = vpop.xlane.xlu2 %685 }
 0x24e   : > { %v1365_v29 = vsub.f32 %v1288_v37, %v686_v28 }
 0x250   : > { %v1048_v30 = vpop.eup %1047  ;;  %v743_v32 = vmul.f32 1.442695, %v1365_v29 }
 0x251   : > { %v777_v31 = vsel %vm668_vm2, %v1048_v30, 0.0 }
 0x252   : > { %1049 = vpow2.f32 %v743_v32  ;;  %778 = vadd.xlane.f32.xlu2 %v777_v31 }
 0x255   : > { %v689_v33 = vpop.xlane.xlu0 %688 }
 0x256   : > { %v1370_v34 = vsub.f32 %v1293_v40, %v689_v33 }
 0x258   : > { %v1050_v35 = vpop.eup %1049  ;;  %v745_v36 = vmul.f32 1.442695, %v1370_v34 }
 0x259   : > { %v780_v38 = vsel %vm668_vm2, %v1050_v35, 0.0 }
 0x25a   : > { %1051 = vpow2.f32 %v745_v36  ;;  %781 = vadd.xlane.f32.xlu0 %v780_v38 }
 0x25d   : > { %v692_v37 = vpop.xlane.xlu1 %691 }
 0x25e   : > { %v1375_v39 = vsub.f32 %v1298_v43, %v692_v37 }
 0x260   : > { %v1052_v41 = vpop.eup %1051  ;;  %v747_v42 = vmul.f32 1.442695, %v1375_v39 }
 0x261   : > { %v783_v44 = vsel %vm668_vm2, %v1052_v41, 0.0 }
 0x262   : > { %1053 = vpow2.f32 %v747_v42  ;;  %784 = vadd.xlane.f32.xlu1 %v783_v44 }
 0x265   : > { %v695_v40 = vpop.xlane.xlu2 %694 }
 0x266   : > { %v1380_v45 = vsub.f32 %v1303_v46, %v695_v40 }
 0x268   : > { %v1054_v47 = vpop.eup %1053  ;;  %v749_v48 = vmul.f32 1.442695, %v1380_v45 }
 0x269   : > { %v786_v50 = vsel %vm668_vm2, %v1054_v47, 0.0 }
 0x26a   : > { %1055 = vpow2.f32 %v749_v48  ;;  %787 = vadd.xlane.f32.xlu2 %v786_v50 }
 0x26d   : > { %v698_v43 = vpop.xlane.xlu0 %697 }
 0x26e   : > { %v1385_v51 = vsub.f32 %v1308_v49, %v698_v43 }
 0x270   : > { %v1056_v53 = vpop.eup %1055  ;;  %v751_v54 = vmul.f32 1.442695, %v1385_v51 }
 0x271   : > { %v789_v56 = vsel %vm668_vm2, %v1056_v53, 0.0 }
 0x272   : > { %1057 = vpow2.f32 %v751_v54  ;;  %790 = vadd.xlane.f32.xlu0 %v789_v56 }
 0x275   : > { %v701_v46 = vpop.xlane.xlu1 %700 }
 0x276   : > { %v1390_v57 = vsub.f32 %v1313_v52, %v701_v46 }
 0x278   : > { %v1058_v59 = vpop.eup %1057  ;;  %v753_v60 = vmul.f32 1.442695, %v1390_v57 }
 0x279   : > { %v792_v62 = vsel %vm668_vm2, %v1058_v59, 0.0 }
 0x27a   : > { %1059 = vpow2.f32 %v753_v60  ;;  %793 = vadd.xlane.f32.xlu1 %v792_v62 }
 0x27d   : > { %v704_v49 = vpop.xlane.xlu2 %703 }
 0x27e   : > { %v1395_v63 = vsub.f32 %v1318_v55, %v704_v49 }
 0x280   : > { %v1060_v1 = vpop.eup %1059  ;;  %v755_v3 = vmul.f32 1.442695, %v1395_v63 }
 0x281   : > { %v795_v4 = vsel %vm668_vm2, %v1060_v1, 0.0 }
 0x282   : > { %1061 = vpow2.f32 %v755_v3  ;;  %796 = vadd.xlane.f32.xlu2 %v795_v4 }
 0x288   : > { %v1062_v52 = vpop.eup %1061 }
 0x289   : > { %v798_v5 = vsel %vm668_vm2, %v1062_v52, 0.0 }
 0x28a   : > { %799 = vadd.xlane.f32.xlu0 %v798_v5 }
 0x28b   : > { %v707_v7 = vpop.xlane.xlu0 %706 }
 0x28c   : > { %v1401_v9 = vsub.f32 %v1323_v58, %v707_v7 }
 0x28e   : > { %v757_v10 = vmul.f32 1.442695, %v1401_v9 }
 0x290   : > { %1063 = vpow2.f32 %v757_v10 }
 0x293   : > { %v710_v55 = vpop.xlane.xlu1 %709 }
 0x294   : > { %v1405_v11 = vsub.f32 %v1328_v61, %v710_v55 }
 0x296   : > { %v1064_v12 = vpop.eup %1063  ;;  %v759_v13 = vmul.f32 1.442695, %v1405_v11 }
 0x297   : > { %v801_v15 = vsel %vm668_vm2, %v1064_v12, 0.0 }
 0x298   : > { %1065 = vpow2.f32 %v759_v13  ;;  %802 = vadd.xlane.f32.xlu1 %v801_v15 }
 0x29b   : > { %v713_v16 = vpop.xlane.xlu2 %712 }
 0x29c   : > { %v1410_v17 = vsub.f32 %v1333_v0, %v713_v16 }
 0x29e   : > { %v1066_v58 = vpop.eup %1065  ;;  %v761_v18 = vmul.f32 1.442695, %v1410_v17 }
 0x29f   : > { %v804_v20 = vsel %vm668_vm2, %v1066_v58, 0.0 }
 0x2a0   : > { %1067 = vpow2.f32 %v761_v18  ;;  %805 = vadd.xlane.f32.xlu2 %v804_v20 }
 0x2a3   : > { %v716_v61 = vpop.xlane.xlu0 %715 }
 0x2a4   : > { %v1415_v21 = vsub.f32 %v1341_v6, %v716_v61 }
 0x2a5   : > { %v767_v22 = vpop.xlane.xlu1 %766 }
 0x2a6   : > { %v1068_v23 = vpop.eup %1067  ;;  %v763_v25 = vmul.f32 1.442695, %v1415_v21  ;;  %1069 = vlog2.f32 %v767_v22 }
 0x2a7   : > { %v807_v0 = vsel %vm668_vm2, %v1068_v23, 0.0 }
 0x2a8   : > { %1071 = vpow2.f32 %v763_v25  ;;  %808 = vadd.xlane.f32.xlu0 %v807_v0 }
 0x2ac   : > { %v1070_v26 = vpop.eup %1069 }
 0x2ad   : > { %v814_v27 = vmul.f32 0.6931472, %v1070_v26  ;;  %v770_v28 = vpop.xlane.xlu2 %769 }
 0x2ae   : > { %v1072_v30 = vpop.eup %1071  ;;  %1073 = vlog2.f32 %v770_v28 }
 0x2af   : > { %v845_v6 = vsub.f32 %v1335_v2, %v814_v27  ;;  %v810_v32 = vsel %vm668_vm2, %v1072_v30, 0.0 }
 0x2b0   : > { %811 = vadd.xlane.f32.xlu1 %v810_v32 }
 0x2b1   : > { %861 = vst.msk [vmem:[%s1424_s16] sm:$0xff] %vm668_vm2, %v845_v6 }
 0x2b4   : > { %v1074_v31 = vpop.eup %1073 }
 0x2b5   : > { %v816_v33 = vmul.f32 0.6931472, %v1074_v31  ;;  %v773_v35 = vpop.xlane.xlu0 %772 }
 0x2b6   : > { %1075 = vlog2.f32 %v773_v35 }
 0x2b7   : > { %v846_v36 = vsub.f32 %v1343_v8, %v816_v33 }
 0x2b9   : > { %862 = vst.msk [vmem:[%s1424_s16 + $0x8] sm:$0xff] %vm668_vm2, %v846_v36 }
 0x2bc   : > { %v1076_v38 = vpop.eup %1075 }
 0x2bd   : > { %v818_v37 = vmul.f32 0.6931472, %v1076_v38  ;;  %v776_v41 = vpop.xlane.xlu1 %775 }
 0x2be   : > { %1077 = vlog2.f32 %v776_v41 }
 0x2bf   : > { %v847_v2 = vsub.f32 %v1350_v14, %v818_v37 }
 0x2c1   : > { %863 = vst.msk [vmem:[%s1424_s16 + $0x10] sm:$0xff] %vm668_vm2, %v847_v2 }
 0x2c4   : > { %v1078_v42 = vpop.eup %1077 }
 0x2c5   : > { %v820_v44 = vmul.f32 0.6931472, %v1078_v42  ;;  %v779_v40 = vpop.xlane.xlu2 %778 }
 0x2c6   : > { %1079 = vlog2.f32 %v779_v40 }
 0x2c7   : > { %v848_v47 = vsub.f32 %v1355_v19, %v820_v44 }
 0x2c9   : > { %864 = vst.msk [vmem:[%s1424_s16 + $0x18] sm:$0xff] %vm668_vm2, %v848_v47 }
 0x2cc   : > { %v1080_v8 = vpop.eup %1079 }
 0x2cd   : > { %v822_v48 = vmul.f32 0.6931472, %v1080_v8  ;;  %v782_v50 = vpop.xlane.xlu0 %781 }
 0x2ce   : > { %1081 = vlog2.f32 %v782_v50 }
 0x2cf   : > { %v849_v43 = vsub.f32 %v1360_v24, %v822_v48 }
 0x2d1   : > { %865 = vst.msk [vmem:[%s1424_s16 + $0x20] sm:$0xff] %vm668_vm2, %v849_v43 }
 0x2d4   : > { %v1082_v14 = vpop.eup %1081 }
 0x2d5   : > { %v824_v53 = vmul.f32 0.6931472, %v1082_v14  ;;  %v785_v54 = vpop.xlane.xlu1 %784 }
 0x2d6   : > { %1083 = vlog2.f32 %v785_v54 }
 0x2d7   : > { %v850_v56 = vsub.f32 %v1365_v29, %v824_v53 }
 0x2d9   : > { %866 = vst.msk [vmem:[%s1424_s16 + $0x28] sm:$0xff] %vm668_vm2, %v850_v56 }
 0x2dc   : > { %v1084_v19 = vpop.eup %1083 }
 0x2dd   : > { %v826_v46 = vmul.f32 0.6931472, %v1084_v19  ;;  %v788_v59 = vpop.xlane.xlu2 %787 }
 0x2de   : > { %1085 = vlog2.f32 %v788_v59 }
 0x2df   : > { %v851_v60 = vsub.f32 %v1370_v34, %v826_v46 }
 0x2e1   : > { %867 = vst.msk [vmem:[%s1424_s16 + $0x30] sm:$0xff] %vm668_vm2, %v851_v60 }
 0x2e4   : > { %v1086_v24 = vpop.eup %1085 }
 0x2e5   : > { %v828_v62 = vmul.f32 0.6931472, %v1086_v24  ;;  %v791_v49 = vpop.xlane.xlu0 %790 }
 0x2e6   : > { %1087 = vlog2.f32 %v791_v49 }
 0x2e7   : > { %v852_v1 = vsub.f32 %v1375_v39, %v828_v62 }
 0x2e9   : > { %868 = vst.msk [vmem:[%s1424_s16 + $0x38] sm:$0xff] %vm668_vm2, %v852_v1 }
 0x2ec   : > { %v1088_v29 = vpop.eup %1087 }
 0x2ed   : > { %v830_v3 = vmul.f32 0.6931472, %v1088_v29  ;;  %v794_v4 = vpop.xlane.xlu1 %793 }
 0x2ee   : > { %1089 = vlog2.f32 %v794_v4 }
 0x2ef   : > { %v853_v52 = vsub.f32 %v1380_v45, %v830_v3 }
 0x2f1   : > { %869 = vst.msk [vmem:[%s1424_s16 + $0x40] sm:$0xff] %vm668_vm2, %v853_v52 }
 0x2f4   : > { %v1090_v34 = vpop.eup %1089 }
 0x2f5   : > { %v832_v5 = vmul.f32 0.6931472, %v1090_v34  ;;  %v797_v7 = vpop.xlane.xlu2 %796 }
 0x2f6   : > { %1091 = vlog2.f32 %v797_v7 }
 0x2f7   : > { %v854_v10 = vsub.f32 %v1385_v51, %v832_v5 }
 0x2f9   : > { %870 = vst.msk [vmem:[%s1424_s16 + $0x48] sm:$0xff] %vm668_vm2, %v854_v10 }
 0x2fc   : > { %v1092_v39 = vpop.eup %1091 }
 0x2fd   : > { %v834_v55 = vmul.f32 0.6931472, %v1092_v39  ;;  %v800_v12 = vpop.xlane.xlu0 %799 }
 0x2fe   : > { %1093 = vlog2.f32 %v800_v12 }
 0x2ff   : > { %v855_v13 = vsub.f32 %v1390_v57, %v834_v55 }
 0x301   : > { %871 = vst.msk [vmem:[%s1424_s16 + $0x50] sm:$0xff] %vm668_vm2, %v855_v13 }
 0x304   : > { %v1094_v45 = vpop.eup %1093 }
 0x305   : > { %v836_v15 = vmul.f32 0.6931472, %v1094_v45 }
 0x307   : > { %v856_v16 = vsub.f32 %v1395_v63, %v836_v15 }
 0x309   : > { %872 = vst.msk [vmem:[%s1424_s16 + $0x58] sm:$0xff] %vm668_vm2, %v856_v16 }
 0x30b   : > { %v803_v58 = vpop.xlane.xlu1 %802 }
 0x30c   : > { %1095 = vlog2.f32 %v803_v58 }
 0x312   : > { %v1096_v51 = vpop.eup %1095 }
 0x313   : > { %v838_v18 = vmul.f32 0.6931472, %v1096_v51  ;;  %v806_v20 = vpop.xlane.xlu2 %805 }
 0x314   : > { %1097 = vlog2.f32 %v806_v20 }
 0x315   : > { %v857_v61 = vsub.f32 %v1401_v9, %v838_v18 }
 0x317   : > { %873 = vst.msk [vmem:[%s1424_s16 + $0x60] sm:$0xff] %vm668_vm2, %v857_v61 }
 0x31a   : > { %v1098_v57 = vpop.eup %1097 }
 0x31b   : > { %v840_v22 = vmul.f32 0.6931472, %v1098_v57  ;;  %v809_v23 = vpop.xlane.xlu0 %808 }
 0x31c   : > { %1099 = vlog2.f32 %v809_v23 }
 0x31d   : > { %v858_v63 = vsub.f32 %v1405_v11, %v840_v22 }
 0x31f   : > { %874 = vst.msk [vmem:[%s1424_s16 + $0x68] sm:$0xff] %vm668_vm2, %v858_v63 }
 0x322   : > { %v1100_v25 = vpop.eup %1099 }
 0x323   : > { %v842_v0 = vmul.f32 0.6931472, %v1100_v25  ;;  %v812_v26 = vpop.xlane.xlu1 %811 }
 0x324   : > { %1101 = vlog2.f32 %v812_v26 }
 0x325   : > { %v859_v27 = vsub.f32 %v1410_v17, %v842_v0 }
 0x327   : > { %875 = vst.msk [vmem:[%s1424_s16 + $0x70] sm:$0xff] %vm668_vm2, %v859_v27 }
 0x32a   : > { %v1102_v9 = vpop.eup %1101 }
 0x32b   : > { %v844_v28 = vmul.f32 0.6931472, %v1102_v9 }
 0x32d   : > { %v860_v30 = vsub.f32 %v1415_v21, %v844_v28 }
 0x32f   : > { %876 = vst.msk [vmem:[%s1424_s16 + $0x78] sm:$0xff] %vm668_vm2, %v860_v30 }
 0x330 PF: > { %s17_s24 = sadd.s32 1, %s1109_s24  }
 0x331   : > { %p14_p4 = scmp.ge.s32.totalorder %s17_s24, 4  }
 0x333   :  { %16 = sbr.rel (!%p14_p4) target bundleno = 1 (0x1), region = 78 }

</bundles_post_ra>
